<compile_context>
chip_gen: v7x
topology: tpu7x:2x2x1
jax: 0.10.0
libtpu: 0.0.40
codegen_flags: <defaults>
</compile_context>

<pallas_src>
import jax
import jax.numpy as jnp
from jax import lax
from jax.experimental import pallas as pl
from jax.experimental.pallas import tpu as pltpu

HIDDEN = 256          # hidden width of the Q-network
MAX_ROW_TILE = 2048   # max rows processed per grid step


def _round_up(x, m):
    return (x + m - 1) // m * m


def _choose_row_tile(n_rows):
    """Pick (row_tile, n_pad): row_tile is a multiple of 128, <= MAX_ROW_TILE,
    and we aim for >= 2 grid steps so v7x's two TensorCores both get work.
    n_pad is the padded row count (== n_rows whenever it already divides)."""
    n128 = _round_up(max(n_rows, 1), 128)
    tile = min(MAX_ROW_TILE, n128)
    if n128 // tile < 2 and n128 >= 256:
        tile = _round_up(n128 // 2, 128)   # guarantee >=2 grid steps (megacore)
    n_pad = _round_up(n128, tile)
    return tile, n_pad


# ----------------------------- Pallas kernel --------------------------------
def _qmlp_kernel(obs_ref, act_ref, w1o_ref, w1a_ref, b1_ref, w2_ref, b2_ref,
                 w3t_ref, b3_ref, o_ref):
    # Layer 1 (f32, tiny K): h1 = relu(obs @ W1o + act @ W1a + b1)
    h1 = jnp.dot(obs_ref[...], w1o_ref[...], preferred_element_type=jnp.float32)
    h1 = h1 + jnp.dot(act_ref[...], w1a_ref[...],
                      preferred_element_type=jnp.float32)
    h1 = jnp.maximum(h1 + b1_ref[...], 0.0)
    # Layer 2 (bf16 MXU, f32 accumulation): h2 = relu(h1 @ W2 + b2)
    h2 = jnp.dot(h1.astype(jnp.bfloat16), w2_ref[...],
                 preferred_element_type=jnp.float32)
    h2 = jnp.maximum(h2 + b2_ref[...], 0.0)
    # Layer 3: lane-dense scalar head. w3t holds 8 identical copies of w3^T, so
    # the contraction yields an (8, ROW_TILE) f32 tile (8 identical sublanes)
    # that maps onto an (8,128)-aligned output block -- no 128-lane padding.
    q = lax.dot_general(w3t_ref[...], h2.astype(jnp.bfloat16),
                        dimension_numbers=(((1,), (1,)), ((), ())),
                        preferred_element_type=jnp.float32)
    o_ref[...] = (q + b3_ref[0]).astype(o_ref.dtype)


def _qmlp_pallas(obs_p, act_p, w1o, w1a, b1, w2, b2, w3t, b3, row_tile):
    n_pad, o_dim = obs_p.shape
    a_dim = act_p.shape[1]
    n_tiles = n_pad // row_tile
    # Weight / bias blocks are grid-invariant (index_map -> (0,0)) so they stay
    # resident in VMEM across the whole grid; inputs/outputs are row-tiled.
    return pl.pallas_call(
        _qmlp_kernel,
        out_shape=jax.ShapeDtypeStruct((8 * n_tiles, row_tile), jnp.float32),
        grid_spec=pltpu.PrefetchScalarGridSpec(
            num_scalar_prefetch=0,
            grid=(n_tiles,),
            in_specs=[
                pl.BlockSpec((row_tile, o_dim), lambda i: (i, 0)),
                pl.BlockSpec((row_tile, a_dim), lambda i: (i, 0)),
                pl.BlockSpec((o_dim, HIDDEN), lambda i: (0, 0)),
                pl.BlockSpec((a_dim, HIDDEN), lambda i: (0, 0)),
                pl.BlockSpec((1, HIDDEN), lambda i: (0, 0)),
                pl.BlockSpec((HIDDEN, HIDDEN), lambda i: (0, 0)),
                pl.BlockSpec((1, HIDDEN), lambda i: (0, 0)),
                pl.BlockSpec((8, HIDDEN), lambda i: (0, 0)),
                pl.BlockSpec(memory_space=pltpu.MemorySpace.SMEM),  # b3 scalar
            ],
            out_specs=pl.BlockSpec((8, row_tile), lambda i: (i, 0)),
        ),
        compiler_params=pltpu.CompilerParams(
            dimension_semantics=("parallel",)),
    )(obs_p, act_p, w1o, w1a, b1, w2, b2, w3t, b3)


# ------------------------- parameter initialization --------------------------
def init_q_params(key, observation_dim, action_dim):
    """Mirrors the PyTorch module: hidden Linear layers use the default
    uniform(-1/sqrt(fan_in), 1/sqrt(fan_in)); the final layer's weight is
    xavier_uniform(gain=0.01) and its bias keeps the default uniform
    (init_module_weights(..., orthogonal_init=False))."""
    in_dim = observation_dim + action_dim
    k = jax.random.split(key, 6)

    def default_linear(kw, kb, fan_in, fan_out):
        bound = 1.0 / jnp.sqrt(fan_in)
        w = jax.random.uniform(kw, (fan_in, fan_out), jnp.float32, -bound, bound)
        b = jax.random.uniform(kb, (fan_out,), jnp.float32, -bound, bound)
        return w, b

    w1, b1 = default_linear(k[0], k[1], in_dim, HIDDEN)
    w2, b2 = default_linear(k[2], k[3], HIDDEN, HIDDEN)

    gain = 0.01
    xavier_bound = gain * jnp.sqrt(6.0 / (HIDDEN + 1))
    w3 = jax.random.uniform(k[4], (HIDDEN, 1), jnp.float32,
                            -xavier_bound, xavier_bound)
    b3 = jax.random.uniform(k[5], (1,), jnp.float32,
                            -1.0 / jnp.sqrt(HIDDEN), 1.0 / jnp.sqrt(HIDDEN))
    return dict(w1=w1, b1=b1, w2=w2, b2=b2, w3=w3, b3=b3)


# ------------------------------ forward wrapper ------------------------------
@jax.jit
def fully_connected_q_forward(params, observations, actions):
    """Matches FullyConnectedQFunction.forward semantics.

    observations: [B, O]  (float32)
    actions:      [B, A] or [B, R, A]
    returns:      [B] or [B, R]
    """
    multiple_actions = (actions.ndim == 3 and observations.ndim == 2)
    batch_size = observations.shape[0]
    if multiple_actions:
        repeats = actions.shape[1]
        # TODO(synk): read the un-repeated obs per tile via the BlockSpec when R
        # divides the row tile instead of materializing the repeat in HBM;
        # broadcast_to keeps it a single cheap copy for now.
        obs = jnp.broadcast_to(observations[:, None, :],
                               (batch_size, repeats, observations.shape[-1]))
        obs = obs.reshape(-1, observations.shape[-1])
        act = actions.reshape(-1, actions.shape[-1])
    else:
        obs, act = observations, actions

    obs = obs.astype(jnp.float32)
    act = act.astype(jnp.float32)
    n, o_dim = obs.shape
    a_dim = act.shape[-1]

    row_tile, n_pad = _choose_row_tile(n)
    if n_pad != n:
        # Rows only; feature dims are never padded (block minor dim == full dim
        # is layout-legal, zeros keep the math exact).
        obs = jnp.pad(obs, ((0, n_pad - n), (0, 0)))
        act = jnp.pad(act, ((0, n_pad - n), (0, 0)))

    w1 = params["w1"].astype(jnp.float32)
    w1o = w1[:o_dim]                       # (O, 256), no padding
    w1a = w1[o_dim:]                       # (A, 256), no padding
    b1 = params["b1"].reshape(1, HIDDEN).astype(jnp.float32)
    w2 = params["w2"].astype(jnp.bfloat16)
    b2 = params["b2"].reshape(1, HIDDEN).astype(jnp.float32)
    # 8 identical copies of w3^T so the kernel's output tile is (8, row_tile)
    w3t = jnp.broadcast_to(params["w3"].astype(jnp.float32).T,
                           (8, HIDDEN)).astype(jnp.bfloat16)
    b3 = params["b3"].reshape(1).astype(jnp.float32)

    out = _qmlp_pallas(obs, act, w1o, w1a, b1, w2, b2, w3t, b3, row_tile)
    # rows 8i..8i+7 of `out` are identical copies of tile i's Q row
    q_values = out[::8].reshape(-1)[:n]   # squeeze(dim=-1)

    if multiple_actions:
        q_values = q_values.reshape(batch_size, -1)
    return q_values


# ------------------------------ pure-JAX reference ---------------------------
def _reference_forward(params, observations, actions):
    multiple_actions = (actions.ndim == 3 and observations.ndim == 2)
    batch_size = observations.shape[0]
    if multiple_actions:
        repeats = actions.shape[1]
        obs = jnp.repeat(observations[:, None, :], repeats, axis=1)
        obs = obs.reshape(-1, observations.shape[-1])
        act = actions.reshape(-1, actions.shape[-1])
    else:
        obs, act = observations, actions
    x = jnp.concatenate([obs, act], axis=-1).astype(jnp.float32)
    h = jnp.maximum(x @ params["w1"] + params["b1"], 0.0)
    h = jnp.maximum(h @ params["w2"] + params["b2"], 0.0)
    q = (h @ params["w3"] + params["b3"])[:, 0]
    if multiple_actions:
        q = q.reshape(batch_size, -1)
    return q


if __name__ == "__main__":
    key = jax.random.PRNGKey(0)
    (k_param, k_obs, k_act2, k_act3,
     k_obs_b, k_act_b, k_obs_c, k_act_c) = jax.random.split(key, 8)

    OBS_DIM, ACT_DIM, BATCH, REPEATS = 17, 6, 2, 8
    params = init_q_params(k_param, OBS_DIM, ACT_DIM)

    observations = jax.random.normal(k_obs, (BATCH, OBS_DIM), jnp.float32)
    actions_2d = jax.random.normal(k_act2, (BATCH, ACT_DIM), jnp.float32)
    actions_3d = jax.random.normal(k_act3, (BATCH, REPEATS, ACT_DIM), jnp.float32)

    # non-128-multiple batch -> exercises the row-padding path with a 2-step grid
    BIG = 300
    observations_big = jax.random.normal(k_obs_b, (BIG, OBS_DIM), jnp.float32)
    actions_big = jax.random.normal(k_act_b, (BIG, ACT_DIM), jnp.float32)

    # tile-multiple batch -> exercises the zero-copy (no-pad) path, 2-step grid
    NICE = 512
    observations_nice = jax.random.normal(k_obs_c, (NICE, OBS_DIM), jnp.float32)
    actions_nice = jax.random.normal(k_act_c, (NICE, ACT_DIM), jnp.float32)

    # single-action path: output shape [B]
    q2 = jax.block_until_ready(
        fully_connected_q_forward(params, observations, actions_2d))
    # multiple-action path: output shape [B, R]
    q3 = jax.block_until_ready(
        fully_connected_q_forward(params, observations, actions_3d))
    # padded big batch path (grid > 1)
    qb = jax.block_until_ready(
        fully_connected_q_forward(params, observations_big, actions_big))
    # zero-copy big batch path (grid > 1, no wrapper pad)
    qn = jax.block_until_ready(
        fully_connected_q_forward(params, observations_nice, actions_nice))

    ref2 = _reference_forward(params, observations, actions_2d)
    ref3 = _reference_forward(params, observations, actions_3d)
    refb = _reference_forward(params, observations_big, actions_big)
    refn = _reference_forward(params, observations_nice, actions_nice)

    assert q2.shape == (BATCH,), q2.shape
    assert q3.shape == (BATCH, REPEATS), q3.shape
    assert qb.shape == (BIG,), qb.shape
    assert qn.shape == (NICE,), qn.shape
    # bf16 matmuls (f32 accumulation) -> slightly looser tolerance than pure f32
    assert jnp.allclose(q2, ref2, atol=2e-3, rtol=2e-2), jnp.max(jnp.abs(q2 - ref2))
    assert jnp.allclose(q3, ref3, atol=2e-3, rtol=2e-2), jnp.max(jnp.abs(q3 - ref3))
    assert jnp.allclose(qb, refb, atol=2e-3, rtol=2e-2), jnp.max(jnp.abs(qb - refb))
    assert jnp.allclose(qn, refn, atol=2e-3, rtol=2e-2), jnp.max(jnp.abs(qn - refn))

    print("KERNEL_OK")
</pallas_src>

<mosaic_0001>
module attributes {stable_mosaic.version = 11 : i64} {
  func.func @_qmlp_kernel(%arg0: i32, %arg1: memref<128x17xf32, #tpu.memory_space<vmem>>, %arg2: memref<128x6xf32, #tpu.memory_space<vmem>>, %arg3: memref<17x256xf32, #tpu.memory_space<vmem>>, %arg4: memref<6x256xf32, #tpu.memory_space<vmem>>, %arg5: memref<1x256xf32, #tpu.memory_space<vmem>>, %arg6: memref<256x256xbf16, #tpu.memory_space<vmem>>, %arg7: memref<1x256xf32, #tpu.memory_space<vmem>>, %arg8: memref<8x256xbf16, #tpu.memory_space<vmem>>, %arg9: memref<1xf32, #tpu.memory_space<smem>>, %arg10: memref<8x128xf32, #tpu.memory_space<vmem>>) attributes {dimension_semantics = [#tpu.dimension_semantics<parallel>], iteration_bounds = array<i64: 1>, scalar_prefetch = 0 : i64, scratch_operands = 0 : i64, tpu.core_type = #tpu.core_type<tc>, window_params = [{transform_indices = @transform_0, window_bounds = array<i64: 128, 17>}, {transform_indices = @transform_1, window_bounds = array<i64: 128, 6>}, {pipeline_mode = #tpu.pipeline_mode<synchronous>, transform_indices = @transform_2, window_bounds = array<i64: 17, 256>}, {pipeline_mode = #tpu.pipeline_mode<synchronous>, transform_indices = @transform_3, window_bounds = array<i64: 6, 256>}, {pipeline_mode = #tpu.pipeline_mode<synchronous>, transform_indices = @transform_4, window_bounds = array<i64: 1, 256>}, {pipeline_mode = #tpu.pipeline_mode<synchronous>, transform_indices = @transform_5, window_bounds = array<i64: 256, 256>}, {pipeline_mode = #tpu.pipeline_mode<synchronous>, transform_indices = @transform_6, window_bounds = array<i64: 1, 256>}, {pipeline_mode = #tpu.pipeline_mode<synchronous>, transform_indices = @transform_7, window_bounds = array<i64: 8, 256>}, {transform_indices = @transform_8, window_bounds = array<i64: 1>}, {transform_indices = @transform_9, window_bounds = array<i64: 8, 128>}]} {
    %c0 = arith.constant 0 : index
    %c0_0 = arith.constant 0 : index
    %0 = vector.load %arg1[%c0, %c0_0] : memref<128x17xf32, #tpu.memory_space<vmem>>, vector<128x17xf32>
    %c0_1 = arith.constant 0 : index
    %c0_2 = arith.constant 0 : index
    %1 = vector.load %arg3[%c0_1, %c0_2] : memref<17x256xf32, #tpu.memory_space<vmem>>, vector<17x256xf32>
    %cst = arith.constant dense<0.000000e+00> : vector<128x256xf32>
    %2 = tpu.matmul %0, %1, %cst {dimension_numbers = #tpu.dot_dimension_numbers<[1], [0], [0], [1], [0, 0, 1, 1], [], []>} : vector<128x17xf32>, vector<17x256xf32>, vector<128x256xf32> -> vector<128x256xf32>
    %c0_3 = arith.constant 0 : index
    %c0_4 = arith.constant 0 : index
    %3 = vector.load %arg2[%c0_3, %c0_4] : memref<128x6xf32, #tpu.memory_space<vmem>>, vector<128x6xf32>
    %c0_5 = arith.constant 0 : index
    %c0_6 = arith.constant 0 : index
    %4 = vector.load %arg4[%c0_5, %c0_6] : memref<6x256xf32, #tpu.memory_space<vmem>>, vector<6x256xf32>
    %cst_7 = arith.constant dense<0.000000e+00> : vector<128x256xf32>
    %5 = tpu.matmul %3, %4, %cst_7 {dimension_numbers = #tpu.dot_dimension_numbers<[1], [0], [0], [1], [0, 0, 1, 1], [], []>} : vector<128x6xf32>, vector<6x256xf32>, vector<128x256xf32> -> vector<128x256xf32>
    %6 = arith.addf %2, %5 : vector<128x256xf32>
    %c0_8 = arith.constant 0 : index
    %c0_9 = arith.constant 0 : index
    %7 = vector.load %arg5[%c0_8, %c0_9] : memref<1x256xf32, #tpu.memory_space<vmem>>, vector<1x256xf32>
    %8 = vector.broadcast %7 : vector<1x256xf32> to vector<128x256xf32>
    %9 = arith.addf %6, %8 : vector<128x256xf32>
    %cst_10 = arith.constant 0.000000e+00 : f32
    %10 = vector.broadcast %cst_10 : f32 to vector<128x256xf32>
    %11 = arith.maximumf %9, %10 : vector<128x256xf32>
    %12 = arith.truncf %11 : vector<128x256xf32> to vector<128x256xbf16>
    %c0_11 = arith.constant 0 : index
    %c0_12 = arith.constant 0 : index
    %13 = vector.load %arg6[%c0_11, %c0_12] : memref<256x256xbf16, #tpu.memory_space<vmem>>, vector<256x256xbf16>
    %cst_13 = arith.constant dense<0.000000e+00> : vector<128x256xf32>
    %14 = tpu.matmul %12, %13, %cst_13 {dimension_numbers = #tpu.dot_dimension_numbers<[1], [0], [0], [1], [0, 0, 1, 1], [], []>} : vector<128x256xbf16>, vector<256x256xbf16>, vector<128x256xf32> -> vector<128x256xf32>
    %c0_14 = arith.constant 0 : index
    %c0_15 = arith.constant 0 : index
    %15 = vector.load %arg7[%c0_14, %c0_15] : memref<1x256xf32, #tpu.memory_space<vmem>>, vector<1x256xf32>
    %16 = vector.broadcast %15 : vector<1x256xf32> to vector<128x256xf32>
    %17 = arith.addf %14, %16 : vector<128x256xf32>
    %cst_16 = arith.constant 0.000000e+00 : f32
    %18 = vector.broadcast %cst_16 : f32 to vector<128x256xf32>
    %19 = arith.maximumf %17, %18 : vector<128x256xf32>
    %c0_17 = arith.constant 0 : index
    %c0_18 = arith.constant 0 : index
    %20 = vector.load %arg8[%c0_17, %c0_18] : memref<8x256xbf16, #tpu.memory_space<vmem>>, vector<8x256xbf16>
    %21 = arith.truncf %19 : vector<128x256xf32> to vector<128x256xbf16>
    %cst_19 = arith.constant dense<0.000000e+00> : vector<8x128xf32>
    %22 = tpu.matmul %20, %21, %cst_19 {dimension_numbers = #tpu.dot_dimension_numbers<[1], [1], [0], [0], [0, 0, 1, 0], [], []>} : vector<8x256xbf16>, vector<128x256xbf16>, vector<8x128xf32> -> vector<8x128xf32>
    %c0_20 = arith.constant 0 : index
    %23 = memref.load %arg9[%c0_20] : memref<1xf32, #tpu.memory_space<smem>>
    %24 = vector.broadcast %23 : f32 to vector<8x128xf32>
    %25 = arith.addf %22, %24 : vector<8x128xf32>
    %c0_21 = arith.constant 0 : index
    %c0_22 = arith.constant 0 : index
    %26 = vector.load %arg10[%c0_21, %c0_22] : memref<8x128xf32, #tpu.memory_space<vmem>>, vector<8x128xf32>
    tpu.vector_store %arg10[%c0_21, %c0_22], %25 {strides = array<i32>} : memref<8x128xf32, #tpu.memory_space<vmem>>, vector<8x128xf32>,
    return
  }
  func.func @transform_0(%arg0: i32) -> (i32, i32) {
    %c0_i32 = arith.constant 0 : i32
    %c0_i32_0 = arith.constant 0 : i32
    return %arg0, %c0_i32 : i32, i32
  }
  func.func @transform_1(%arg0: i32) -> (i32, i32) {
    %c0_i32 = arith.constant 0 : i32
    %c0_i32_0 = arith.constant 0 : i32
    return %arg0, %c0_i32 : i32, i32
  }
  func.func @transform_2(%arg0: i32) -> (i32, i32) {
    %c0_i32 = arith.constant 0 : i32
    %c0_i32_0 = arith.constant 0 : i32
    %c0_i32_1 = arith.constant 0 : i32
    return %c0_i32, %c0_i32_0 : i32, i32
  }
  func.func @transform_3(%arg0: i32) -> (i32, i32) {
    %c0_i32 = arith.constant 0 : i32
    %c0_i32_0 = arith.constant 0 : i32
    %c0_i32_1 = arith.constant 0 : i32
    return %c0_i32, %c0_i32_0 : i32, i32
  }
  func.func @transform_4(%arg0: i32) -> (i32, i32) {
    %c0_i32 = arith.constant 0 : i32
    %c0_i32_0 = arith.constant 0 : i32
    %c0_i32_1 = arith.constant 0 : i32
    return %c0_i32, %c0_i32_0 : i32, i32
  }
  func.func @transform_5(%arg0: i32) -> (i32, i32) {
    %c0_i32 = arith.constant 0 : i32
    %c0_i32_0 = arith.constant 0 : i32
    %c0_i32_1 = arith.constant 0 : i32
    return %c0_i32, %c0_i32_0 : i32, i32
  }
  func.func @transform_6(%arg0: i32) -> (i32, i32) {
    %c0_i32 = arith.constant 0 : i32
    %c0_i32_0 = arith.constant 0 : i32
    %c0_i32_1 = arith.constant 0 : i32
    return %c0_i32, %c0_i32_0 : i32, i32
  }
  func.func @transform_7(%arg0: i32) -> (i32, i32) {
    %c0_i32 = arith.constant 0 : i32
    %c0_i32_0 = arith.constant 0 : i32
    %c0_i32_1 = arith.constant 0 : i32
    return %c0_i32, %c0_i32_0 : i32, i32
  }
  func.func @transform_8(%arg0: i32) -> i32 {
    %c0_i32 = arith.constant 0 : i32
    %c0_i32_0 = arith.constant 0 : i32
    return %c0_i32 : i32
  }
  func.func @transform_9(%arg0: i32) -> (i32, i32) {
    %c0_i32 = arith.constant 0 : i32
    %c0_i32_0 = arith.constant 0 : i32
    return %arg0, %c0_i32 : i32, i32
  }
}

</mosaic_0001>

<bundles_post_ra>
// kernel: fully_connected_q_forward.1
= control target key start
LH: loop header
LB: loop body
LE: loop exit
PB: predicated region body
PF: predicated region fallthrough
CT: control target
= control target key end

     0   :  { %vm123_vm0 = vcmask 1045504   ;;  %v1177_v2 = vmov 0.0   ;;  %vm74_vm1 = vcmask 48128   ;;  %vm340_vm2 = vcmask 1040384   ;;  %s1613_s3 = inlined_call_operand.vmem [shape: f32[6,256], index: 3, kind: input, shape index: {}]   ;;  %s1614_s1 = inlined_call_operand.vmem [shape: f32[128,6], index: 1, kind: input, shape index: {}]   ;;  %s1615_s2 = inlined_call_operand.vmem [shape: f32[17,256], index: 2, kind: input, shape index: {}]   ;;  %s1616_s5 = inlined_call_operand.vmem [shape: bf16[256,256], index: 5, kind: input, shape index: {}]   ;;  %s1617_s0 = inlined_call_operand.vmem [shape: f32[128,17], index: 0, kind: input, shape index: {}]   ;;  %s1618_s4 = inlined_call_operand.vmem [shape: f32[1,256], index: 4, kind: input, shape index: {}]   ;;  %s1619_s7 = inlined_call_operand.vmem [shape: bf16[8,256], index: 7, kind: input, shape index: {}]   ;;  %s1620_s6 = inlined_call_operand.vmem [shape: f32[1,256], index: 6, kind: input, shape index: {}]   ;;  %s1621_s8 = inlined_call_operand.<no memory space> [shape: f32[1], index: 8, kind: input, shape index: {}]   ;;  %s1622_s9 = inlined_call_operand.vmem [shape: f32[8,128], index: 9, kind: output, shape index: {}]  }
   0x1   :  { %v73_v0 = vld [vmem:[%s1613_s3 + $0x8] sm:$0x3f]  ;;  %v72_v1 = vld [vmem:[%s1613_s3] sm:$0x3f]  ;;  %194 = vmatprep.mubr.f32.mxu0 %v1177_v2  ;;  %v53_v5 = vld [vmem:[%s1615_s2 + $0x18] sm:$0xff]  ;;  %vm291_vm3 = vcmask 138240  }
   0x2   :  { %v56_v3 = vld [vmem:[%s1614_s1] sm:$0xff]  ;;  %1020 = vmatprep.subr.msk.mxu0 %vm123_vm0, %v73_v0  ;;  %v51_v4 = vld [vmem:[%s1615_s2 + $0x8] sm:$0xff]  ;;  %v52_v8 = vld [vmem:[%s1615_s2 + $0x10] sm:$0xff] }
   0x3   :  { %v50_v6 = vld [vmem:[%s1615_s2] sm:$0xff]  ;;  %1021 = vmatpush1.msk.msra.mxu0 %vm123_vm0, %v72_v1  ;;  %v1090_v7 = vpack.c.bf16 %v53_v5, %v51_v4  ;;  %v57_v10 = vld [vmem:[%s1614_s1 + $0x8] sm:$0xff]  ;;  %v58_v13 = vld [vmem:[%s1614_s1 + $0x10] sm:$0xff] }
   0x4   :  { %1022 = vmatmul.mubr.msk.f32.vlgmr.msra.gmra.mrb[0].mxu0 %vm74_vm1, %v56_v3  ;;  %v1092_v9 = vpack.c.bf16 %v52_v8, %v50_v6  ;;  %v55_v11 = vld [vmem:[%s1615_s2 + $0x28] sm:$0x1]  ;;  %v54_v12 = vld [vmem:[%s1615_s2 + $0x20] sm:$0x1]  ;;  %v59_v14 = vld [vmem:[%s1614_s1 + $0x18] sm:$0xff] }
   0x5   :  { %1091 = vmatprep.subr.bf16.mxu0 %v1090_v7  ;;  %200 = vmatprep.mubr.f32.mxu0 %v1177_v2  ;;  %v1127_v15 = vld [vmem:[%s1616_s5 + $0x4] ss:$8 sps:$4 sm:$0xff]   ;;  %v1129_v16 = vld [vmem:[%s1616_s5] ss:$8 sps:$4 sm:$0xff]   ;;  %v1130_v17 = vld [vmem:[%s1616_s5 + $0x14] ss:$8 sps:$4 sm:$0xff]  }
   0x6   :  { %1093 = vmatpush1.bf16.msra.mxu0 %v1092_v9  ;;  %v60_v18 = vld [vmem:[%s1614_s1 + $0x20] sm:$0xff]  ;;  %804 = vmatprep.subr.bf16.mxu1 %v1127_v15  ;;  %v1132_v19 = vld [vmem:[%s1616_s5 + $0x10] ss:$8 sps:$4 sm:$0xff]   ;;  %v61_v21 = vld [vmem:[%s1614_s1 + $0x28] sm:$0xff] }
   0x7   :  { %1038 = vmatprep.subr.msk.mxu0 %vm340_vm2, %v55_v11  ;;  %805 = vmatpush1.bf16.msra.mxu1 %v1129_v16  ;;  %v1133_v20 = vld [vmem:[%s1616_s5 + $0x24] ss:$8 sps:$4 sm:$0xff]   ;;  %v1135_v22 = vld [vmem:[%s1616_s5 + $0x20] ss:$8 sps:$4 sm:$0xff]   ;;  %v1136_v23 = vld [vmem:[%s1616_s5 + $0x34] ss:$8 sps:$4 sm:$0xff]   ;;  %v510_v11 = vlaneseq }
   0x8   :  { %1023 = vmatmul.mubr.msk.f32.gmra.mrb[2].mxu0 %vm74_vm1, %v57_v10  ;;  %806 = vmatprep.subr.bf16.mxu1 %v1130_v17  ;;  %v62_v24 = vld [vmem:[%s1614_s1 + $0x30] sm:$0xff]  ;;  %v1139_v26 = vld [vmem:[%s1616_s5 + $0x44] ss:$8 sps:$4 sm:$0xff]   ;;  %v63_v27 = vld [vmem:[%s1614_s1 + $0x38] sm:$0xff] }
   0x9   :  { %206 = vmatprep.mubr.f32.mxu0 %v1177_v2  ;;  %v1138_v25 = vld [vmem:[%s1616_s5 + $0x30] ss:$8 sps:$4 sm:$0xff]   ;;  %v1141_v28 = vld [vmem:[%s1616_s5 + $0x40] ss:$8 sps:$4 sm:$0xff]   ;;  %v1142_v29 = vld [vmem:[%s1616_s5 + $0x54] ss:$8 sps:$4 sm:$0xff]  }
   0xa   :  { %1039 = vmatpush1.msk.msra.mxu0 %vm340_vm2, %v54_v12  ;;  %v64_v30 = vld [vmem:[%s1614_s1 + $0x40] sm:$0xff]  ;;  %v1144_v31 = vld [vmem:[%s1616_s5 + $0x50] ss:$8 sps:$4 sm:$0xff]   ;;  %v65_v33 = vld [vmem:[%s1614_s1 + $0x48] sm:$0xff]  ;;  %v1508_v12 = vshrl.u32 %v510_v11, 7 }
   0xb   :  { %807 = vmatpush1.bf16.msra.mxu1 %v1132_v19  ;;  %v1145_v32 = vld [vmem:[%s1616_s5 + $0x64] ss:$8 sps:$4 sm:$0xff]   ;;  %v1147_v34 = vld [vmem:[%s1616_s5 + $0x60] ss:$8 sps:$4 sm:$0xff]   ;;  %v1148_v35 = vld [vmem:[%s1616_s5 + $0x74] ss:$8 sps:$4 sm:$0xff]  }
   0xc   :  { %1024 = vmatmul.mubr.msk.f32.gmra.mrb[4].mxu0 %vm74_vm1, %v58_v13  ;;  %808 = vmatprep.subr.bf16.mxu1 %v1133_v20  ;;  %v66_v36 = vld [vmem:[%s1614_s1 + $0x50] sm:$0xff]  ;;  %v1151_v38 = vld [vmem:[%s1616_s5 + $0x84] ss:$8 sps:$4 sm:$0xff]   ;;  %v67_v39 = vld [vmem:[%s1614_s1 + $0x58] sm:$0xff]  ;;  %v512_v13 = vsub.s32 0, %v1508_v12  ;;  %v516_v15 = vsub.s32 1, %v1508_v12 }
   0xd   :  { %212 = vmatprep.mubr.f32.mxu0 %v1177_v2  ;;  %v1150_v37 = vld [vmem:[%s1616_s5 + $0x70] ss:$8 sps:$4 sm:$0xff]   ;;  %v1153_v40 = vld [vmem:[%s1616_s5 + $0x80] ss:$8 sps:$4 sm:$0xff]   ;;  %v1154_v41 = vld [vmem:[%s1616_s5 + $0x94] ss:$8 sps:$4 sm:$0xff]  }
   0xe   :  { %v68_v42 = vld [vmem:[%s1614_s1 + $0x60] sm:$0xff]  ;;  %v1156_v43 = vld [vmem:[%s1616_s5 + $0x90] ss:$8 sps:$4 sm:$0xff]   ;;  %v69_v45 = vld [vmem:[%s1614_s1 + $0x68] sm:$0xff] }
   0xf   :  { %809 = vmatpush1.bf16.msra.mxu1 %v1135_v22  ;;  %v1157_v44 = vld [vmem:[%s1616_s5 + $0xa4] ss:$8 sps:$4 sm:$0xff]   ;;  %v1159_v46 = vld [vmem:[%s1616_s5 + $0xa0] ss:$8 sps:$4 sm:$0xff]   ;;  %v1160_v47 = vld [vmem:[%s1616_s5 + $0xb4] ss:$8 sps:$4 sm:$0xff]  }
  0x10   :  { %1025 = vmatmul.mubr.msk.f32.gmra.mrb[6].mxu0 %vm74_vm1, %v59_v14  ;;  %810 = vmatprep.subr.bf16.mxu1 %v1136_v23  ;;  %v70_v48 = vld [vmem:[%s1614_s1 + $0x70] sm:$0xff]  ;;  %v1163_v50 = vld [vmem:[%s1616_s5 + $0xc4] ss:$8 sps:$4 sm:$0xff]   ;;  %v71_v51 = vld [vmem:[%s1614_s1 + $0x78] sm:$0xff] }
  0x11   :  { %218 = vmatprep.mubr.f32.mxu0 %v1177_v2  ;;  %v1162_v49 = vld [vmem:[%s1616_s5 + $0xb0] ss:$8 sps:$4 sm:$0xff]   ;;  %v1165_v52 = vld [vmem:[%s1616_s5 + $0xc0] ss:$8 sps:$4 sm:$0xff]   ;;  %v1166_v6 = vld [vmem:[%s1616_s5 + $0xd4] ss:$8 sps:$4 sm:$0xff]  }
  0x12   :  { %v34_v53 = vld [vmem:[%s1617_s0] sm:$0xff]  ;;  %v35_v54 = vld [vmem:[%s1617_s0 + $0x8] sm:$0xff]  ;;  %v36_v55 = vld [vmem:[%s1617_s0 + $0x10] sm:$0xff] }
  0x13   :  { %811 = vmatpush1.bf16.msra.mxu1 %v1138_v25  ;;  %v37_v56 = vld [vmem:[%s1617_s0 + $0x18] sm:$0xff]  ;;  %v38_v57 = vld [vmem:[%s1617_s0 + $0x20] sm:$0xff]  ;;  %v39_v58 = vld [vmem:[%s1617_s0 + $0x28] sm:$0xff] }
  0x14   :  { %1026 = vmatmul.mubr.msk.f32.gmra.mrb[8].mxu0 %vm74_vm1, %v60_v18  ;;  %812 = vmatprep.subr.bf16.mxu1 %v1139_v26  ;;  %v40_v59 = vld [vmem:[%s1617_s0 + $0x30] sm:$0xff]  ;;  %v41_v60 = vld [vmem:[%s1617_s0 + $0x38] sm:$0xff]  ;;  %v42_v61 = vld [vmem:[%s1617_s0 + $0x40] sm:$0xff] }
  0x15   :  { %224 = vmatprep.mubr.f32.mxu0 %v1177_v2  ;;  %v43_v62 = vld [vmem:[%s1617_s0 + $0x48] sm:$0xff]  ;;  %v44_v63 = vld [vmem:[%s1617_s0 + $0x50] sm:$0xff]  ;;  %v45_v0 = vld [vmem:[%s1617_s0 + $0x58] sm:$0xff] }
  0x16   :  { %v46_v1 = vld [vmem:[%s1617_s0 + $0x60] sm:$0xff]  ;;  %v47_v3 = vld [vmem:[%s1617_s0 + $0x68] sm:$0xff]  ;;  %v48_v4 = vld [vmem:[%s1617_s0 + $0x70] sm:$0xff] }
  0x17   :  { %813 = vmatpush1.bf16.msra.mxu1 %v1141_v28  ;;  %v49_v5 = vld [vmem:[%s1617_s0 + $0x78] sm:$0xff]  ;;  %v1171_v8 = vld [vmem:[%s1616_s5 + $0xe0] ss:$8 sps:$4 sm:$0xff]  }
  0x18   :  { %1027 = vmatmul.mubr.msk.f32.gmra.mrb[10].mxu0 %vm74_vm1, %v61_v21  ;;  %814 = vmatprep.subr.bf16.mxu1 %v1142_v29  ;;  %v1168_v7 = vld [vmem:[%s1616_s5 + $0xd0] ss:$8 sps:$4 sm:$0xff]   ;;  %v1172_v9 = vld [vmem:[%s1616_s5 + $0xf4] ss:$8 sps:$4 sm:$0xff]   ;;  %v508_v14 = vld [vmem:[%s1618_s4] sm:$0x3] }
  0x19   :  { %230 = vmatprep.mubr.f32.mxu0 %v1177_v2  ;;  %v1174_v10 = vld [vmem:[%s1616_s5 + $0xf0] ss:$8 sps:$4 sm:$0xff]   ;;  %v1517_v16 = vrot.slane %v508_v14, %v512_v13  ;;  %v1521_v18 = vrot.slane %v508_v14, %v516_v15 }
  0x1b   :  { %815 = vmatpush1.bf16.msra.mxu1 %v1144_v31 }
  0x1c   :  { %1028 = vmatmul.mubr.msk.f32.gmra.mrb[12].mxu0 %vm74_vm1, %v62_v24  ;;  %816 = vmatprep.subr.bf16.mxu1 %v1145_v32 }
  0x1d   :  { %236 = vmatprep.mubr.f32.mxu0 %v1177_v2 }
  0x1f   :  { %817 = vmatpush1.bf16.msra.mxu1 %v1147_v34 }
  0x20   :  { %1029 = vmatmul.mubr.msk.f32.gmra.mrb[14].mxu0 %vm74_vm1, %v63_v27  ;;  %818 = vmatprep.subr.bf16.mxu1 %v1148_v35 }
  0x21   :  { %242 = vmatprep.mubr.f32.mxu0 %v1177_v2 }
  0x23   :  { %819 = vmatpush1.bf16.msra.mxu1 %v1150_v37 }
  0x24   :  { %1030 = vmatmul.mubr.msk.f32.gmra.mrb[16].mxu0 %vm74_vm1, %v64_v30  ;;  %820 = vmatprep.subr.bf16.mxu1 %v1151_v38 }
  0x25   :  { %248 = vmatprep.mubr.f32.mxu0 %v1177_v2 }
  0x27   :  { %821 = vmatpush1.bf16.msra.mxu1 %v1153_v40 }
  0x28   :  { %1031 = vmatmul.mubr.msk.f32.gmra.mrb[18].mxu0 %vm74_vm1, %v65_v33  ;;  %822 = vmatprep.subr.bf16.mxu1 %v1154_v41 }
  0x29   :  { %254 = vmatprep.mubr.f32.mxu0 %v1177_v2 }
  0x2b   :  { %823 = vmatpush1.bf16.msra.mxu1 %v1156_v43 }
  0x2c   :  { %1032 = vmatmul.mubr.msk.f32.gmra.mrb[20].mxu0 %vm74_vm1, %v66_v36  ;;  %824 = vmatprep.subr.bf16.mxu1 %v1157_v44 }
  0x2d   :  { %260 = vmatprep.mubr.f32.mxu0 %v1177_v2 }
  0x2f   :  { %825 = vmatpush1.bf16.msra.mxu1 %v1159_v46 }
  0x30   :  { %1033 = vmatmul.mubr.msk.f32.gmra.mrb[22].mxu0 %vm74_vm1, %v67_v39  ;;  %826 = vmatprep.subr.bf16.mxu1 %v1160_v47 }
  0x31   :  { %266 = vmatprep.mubr.f32.mxu0 %v1177_v2 }
  0x33   :  { %827 = vmatpush1.bf16.msra.mxu1 %v1162_v49 }
  0x34   :  { %1034 = vmatmul.mubr.msk.f32.gmra.mrb[24].mxu0 %vm74_vm1, %v68_v42  ;;  %828 = vmatprep.subr.bf16.mxu1 %v1163_v50 }
  0x35   :  { %272 = vmatprep.mubr.f32.mxu0 %v1177_v2 }
  0x37   :  { %829 = vmatpush1.bf16.msra.mxu1 %v1165_v52 }
  0x38   :  { %1035 = vmatmul.mubr.msk.f32.gmra.mrb[26].mxu0 %vm74_vm1, %v69_v45  ;;  %830 = vmatprep.subr.bf16.mxu1 %v1166_v6 }
  0x39   :  { %278 = vmatprep.mubr.f32.mxu0 %v1177_v2 }
  0x3b   :  { %831 = vmatpush1.bf16.msra.mxu1 %v1168_v7 }
  0x3c   :  { %1036 = vmatmul.mubr.msk.f32.gmra.mrb[28].mxu0 %vm74_vm1, %v70_v48 }
  0x3d   :  { %284 = vmatprep.mubr.f32.mxu0 %v1177_v2 }
  0x40   :  { %1037 = vmatmul.mubr.msk.f32.gmra.mrb[30].mxu0 %vm74_vm1, %v71_v51 }
  0x41   :  { %411 = vmatprep.mubr.f32.mxu0 %v1177_v2 }
  0x44   :  { %1040 = vmatmul.mubr.msk.f32.vlgmr.msra.gmra.mrb[0].mxu0 %vm291_vm3, %v34_v53 }
  0x45   :  { %417 = vmatprep.mubr.f32.mxu0 %v1177_v2 }
  0x48   :  { %1041 = vmatmul.mubr.msk.f32.gmra.mrb[2].mxu0 %vm291_vm3, %v35_v54 }
  0x49   :  { %423 = vmatprep.mubr.f32.mxu0 %v1177_v2 }
  0x4c   :  { %1042 = vmatmul.mubr.msk.f32.gmra.mrb[4].mxu0 %vm291_vm3, %v36_v55 }
  0x4d   :  { %429 = vmatprep.mubr.f32.mxu0 %v1177_v2 }
  0x50   :  { %1043 = vmatmul.mubr.msk.f32.gmra.mrb[6].mxu0 %vm291_vm3, %v37_v56 }
  0x51   :  { %435 = vmatprep.mubr.f32.mxu0 %v1177_v2 }
  0x54   :  { %1044 = vmatmul.mubr.msk.f32.gmra.mrb[8].mxu0 %vm291_vm3, %v38_v57 }
  0x55   :  { %441 = vmatprep.mubr.f32.mxu0 %v1177_v2 }
  0x58   :  { %1045 = vmatmul.mubr.msk.f32.gmra.mrb[10].mxu0 %vm291_vm3, %v39_v58 }
  0x59   :  { %447 = vmatprep.mubr.f32.mxu0 %v1177_v2 }
  0x5c   :  { %1046 = vmatmul.mubr.msk.f32.gmra.mrb[12].mxu0 %vm291_vm3, %v40_v59 }
  0x5d   :  { %453 = vmatprep.mubr.f32.mxu0 %v1177_v2 }
  0x60   :  { %1047 = vmatmul.mubr.msk.f32.gmra.mrb[14].mxu0 %vm291_vm3, %v41_v60 }
  0x61   :  { %459 = vmatprep.mubr.f32.mxu0 %v1177_v2 }
  0x64   :  { %1048 = vmatmul.mubr.msk.f32.gmra.mrb[16].mxu0 %vm291_vm3, %v42_v61 }
  0x65   :  { %465 = vmatprep.mubr.f32.mxu0 %v1177_v2 }
  0x68   :  { %1049 = vmatmul.mubr.msk.f32.gmra.mrb[18].mxu0 %vm291_vm3, %v43_v62 }
  0x69   :  { %471 = vmatprep.mubr.f32.mxu0 %v1177_v2 }
  0x6c   :  { %1050 = vmatmul.mubr.msk.f32.gmra.mrb[20].mxu0 %vm291_vm3, %v44_v63 }
  0x6d   :  { %477 = vmatprep.mubr.f32.mxu0 %v1177_v2 }
  0x70   :  { %1051 = vmatmul.mubr.msk.f32.gmra.mrb[22].mxu0 %vm291_vm3, %v45_v0 }
  0x71   :  { %483 = vmatprep.mubr.f32.mxu0 %v1177_v2 }
  0x74   :  { %1052 = vmatmul.mubr.msk.f32.gmra.mrb[24].mxu0 %vm291_vm3, %v46_v1 }
  0x75   :  { %489 = vmatprep.mubr.f32.mxu0 %v1177_v2 }
  0x78   :  { %1053 = vmatmul.mubr.msk.f32.gmra.mrb[26].mxu0 %vm291_vm3, %v47_v3 }
  0x79   :  { %495 = vmatprep.mubr.f32.mxu0 %v1177_v2 }
  0x7c   :  { %1054 = vmatmul.mubr.msk.f32.gmra.mrb[28].mxu0 %vm291_vm3, %v48_v4 }
  0x7d   :  { %501 = vmatprep.mubr.f32.mxu0 %v1177_v2  ;;  %v1169_v2 = vld [vmem:[%s1616_s5 + $0xe4] ss:$8 sps:$4 sm:$0xff]  }
  0x7e   :  { %832 = vmatprep.subr.bf16.mxu1 %v1169_v2 }
  0x7f   :  { %833 = vmatpush1.bf16.msra.mxu1 %v1171_v8 }
  0x80   :  { %1055 = vmatmul.mubr.msk.f32.gmra.mrb[30].mxu0 %vm291_vm3, %v49_v5  ;;  %834 = vmatprep.subr.bf16.mxu1 %v1172_v9 }
  0x83   :  { %835 = vmatpush1.bf16.msra.mxu1 %v1174_v10 }
 0x117   :  { %v413_v17 = vpop.f32.mrb[0].mxu0 }
 0x118   :  { %v415_v19 = vpop.f32.mrb[1].mxu0  ;;  %v520_v20 = vadd.f32 %v1517_v16, %v413_v17 }
 0x119   :  { %v521_v21 = vadd.f32 %v1521_v18, %v415_v19 }
 0x11a   :  { %v552_v26 = vmax.f32 %v520_v20, 0.0 }
 0x11b   :  { %v419_v22 = vpop.f32.mrb[2].mxu0  ;;  %v553_v28 = vmax.f32 %v521_v21, 0.0 }
 0x11c   :  { %v522_v23 = vadd.f32 %v1517_v16, %v419_v22  ;;  %v421_v24 = vpop.f32.mrb[3].mxu0 }
 0x11d   :  { %v523_v25 = vadd.f32 %v1521_v18, %v421_v24 }
 0x11e   :  { %v554_v27 = vmax.f32 %v522_v23, 0.0 }
 0x11f   :  { %v555_v29 = vmax.f32 %v523_v25, 0.0  ;;  %v425_v30 = vpop.f32.mrb[4].mxu0 }
 0x120   :  { %v584_v31 = vpack.c.bf16 %v554_v27, %v552_v26  ;;  %v427_v32 = vpop.f32.mrb[5].mxu0  ;;  %v524_v34 = vadd.f32 %v1517_v16, %v425_v30 }
 0x121   :  { %v585_v33 = vpack.c.bf16 %v555_v29, %v553_v28  ;;  %v525_v35 = vadd.f32 %v1521_v18, %v427_v32 }
 0x122   :  { %v556_v40 = vmax.f32 %v524_v34, 0.0 }
 0x123   :  { %v431_v36 = vpop.f32.mrb[6].mxu0  ;;  %836 = vmatprep.mubr.bf16.mxu1 %v585_v33  ;;  %v557_v42 = vmax.f32 %v525_v35, 0.0 }
 0x124   :  { %v526_v37 = vadd.f32 %v1517_v16, %v431_v36  ;;  %v433_v38 = vpop.f32.mrb[7].mxu0  ;;  %837 = vmatmul.mubr.bf16.vlgmr.msra.gmra.mrb[0].mxu1 %v584_v31 }
 0x125   :  { %v527_v39 = vadd.f32 %v1521_v18, %v433_v38 }
 0x126   :  { %v558_v41 = vmax.f32 %v526_v37, 0.0 }
 0x127   :  { %v559_v43 = vmax.f32 %v527_v39, 0.0  ;;  %v437_v44 = vpop.f32.mrb[8].mxu0 }
 0x128   :  { %v586_v45 = vpack.c.bf16 %v558_v41, %v556_v40  ;;  %v439_v46 = vpop.f32.mrb[9].mxu0  ;;  %v528_v48 = vadd.f32 %v1517_v16, %v437_v44 }
 0x129   :  { %v587_v47 = vpack.c.bf16 %v559_v43, %v557_v42  ;;  %v529_v49 = vadd.f32 %v1521_v18, %v439_v46 }
 0x12a   :  { %v560_v54 = vmax.f32 %v528_v48, 0.0 }
 0x12b   :  { %v443_v50 = vpop.f32.mrb[10].mxu0  ;;  %846 = vmatprep.mubr.bf16.mxu1 %v587_v47  ;;  %v561_v56 = vmax.f32 %v529_v49, 0.0 }
 0x12c   :  { %v530_v51 = vadd.f32 %v1517_v16, %v443_v50  ;;  %v445_v52 = vpop.f32.mrb[11].mxu0  ;;  %847 = vmatmul.mubr.bf16.gmra.mrb[4].mxu1 %v586_v45 }
 0x12d   :  { %v531_v53 = vadd.f32 %v1521_v18, %v445_v52 }
 0x12e   :  { %v562_v55 = vmax.f32 %v530_v51, 0.0 }
 0x12f   :  { %v563_v57 = vmax.f32 %v531_v53, 0.0  ;;  %v449_v58 = vpop.f32.mrb[12].mxu0 }
 0x130   :  { %v588_v59 = vpack.c.bf16 %v562_v55, %v560_v54  ;;  %v451_v60 = vpop.f32.mrb[13].mxu0  ;;  %v532_v62 = vadd.f32 %v1517_v16, %v449_v58 }
 0x131   :  { %v589_v61 = vpack.c.bf16 %v563_v57, %v561_v56  ;;  %v533_v63 = vadd.f32 %v1521_v18, %v451_v60 }
 0x132   :  { %v564_v5 = vmax.f32 %v532_v62, 0.0 }
 0x133   :  { %v455_v0 = vpop.f32.mrb[14].mxu0  ;;  %856 = vmatprep.mubr.bf16.mxu1 %v589_v61  ;;  %v565_v7 = vmax.f32 %v533_v63, 0.0 }
 0x134   :  { %v534_v1 = vadd.f32 %v1517_v16, %v455_v0  ;;  %v457_v3 = vpop.f32.mrb[15].mxu0  ;;  %857 = vmatmul.mubr.bf16.gmra.mrb[8].mxu1 %v588_v59 }
 0x135   :  { %v535_v4 = vadd.f32 %v1521_v18, %v457_v3 }
 0x136   :  { %v566_v6 = vmax.f32 %v534_v1, 0.0 }
 0x137   :  { %v567_v2 = vmax.f32 %v535_v4, 0.0  ;;  %v461_v8 = vpop.f32.mrb[16].mxu0 }
 0x138   :  { %v590_v9 = vpack.c.bf16 %v566_v6, %v564_v5  ;;  %v463_v10 = vpop.f32.mrb[17].mxu0  ;;  %v536_v14 = vadd.f32 %v1517_v16, %v461_v8 }
 0x139   :  { %v591_v11 = vpack.c.bf16 %v567_v2, %v565_v7  ;;  %v537_v17 = vadd.f32 %v1521_v18, %v463_v10  ;;  %v1558_v2 = vld [vmem:[%s1619_s7] sm:$0xff] }
 0x13a   :  { %v568_v23 = vmax.f32 %v536_v14, 0.0 }
 0x13b   :  { %v467_v19 = vpop.f32.mrb[18].mxu0  ;;  %866 = vmatprep.mubr.bf16.mxu1 %v591_v11  ;;  %v569_v25 = vmax.f32 %v537_v17, 0.0 }
 0x13c   :  { %v538_v20 = vadd.f32 %v1517_v16, %v467_v19  ;;  %v469_v21 = vpop.f32.mrb[19].mxu0  ;;  %867 = vmatmul.mubr.bf16.gmra.mrb[12].mxu1 %v590_v9 }
 0x13d   :  { %v539_v22 = vadd.f32 %v1521_v18, %v469_v21 }
 0x13e   :  { %v570_v24 = vmax.f32 %v538_v20, 0.0 }
 0x13f   :  { %v571_v26 = vmax.f32 %v539_v22, 0.0  ;;  %v473_v27 = vpop.f32.mrb[20].mxu0 }
 0x140   :  { %v592_v28 = vpack.c.bf16 %v570_v24, %v568_v23  ;;  %v475_v29 = vpop.f32.mrb[21].mxu0  ;;  %v540_v31 = vadd.f32 %v1517_v16, %v473_v27 }
 0x141   :  { %v593_v30 = vpack.c.bf16 %v571_v26, %v569_v25  ;;  %v541_v32 = vadd.f32 %v1521_v18, %v475_v29 }
 0x142   :  { %v572_v37 = vmax.f32 %v540_v31, 0.0 }
 0x143   :  { %v479_v33 = vpop.f32.mrb[22].mxu0  ;;  %876 = vmatprep.mubr.bf16.mxu1 %v593_v30  ;;  %v573_v39 = vmax.f32 %v541_v32, 0.0 }
 0x144   :  { %v542_v34 = vadd.f32 %v1517_v16, %v479_v33  ;;  %v481_v35 = vpop.f32.mrb[23].mxu0  ;;  %877 = vmatmul.mubr.bf16.gmra.mrb[16].mxu1 %v592_v28 }
 0x145   :  { %v543_v36 = vadd.f32 %v1521_v18, %v481_v35 }
 0x146   :  { %v574_v38 = vmax.f32 %v542_v34, 0.0 }
 0x147   :  { %v575_v40 = vmax.f32 %v543_v36, 0.0  ;;  %v485_v41 = vpop.f32.mrb[24].mxu0 }
 0x148   :  { %v594_v42 = vpack.c.bf16 %v574_v38, %v572_v37  ;;  %v487_v43 = vpop.f32.mrb[25].mxu0  ;;  %v544_v45 = vadd.f32 %v1517_v16, %v485_v41 }
 0x149   :  { %v595_v44 = vpack.c.bf16 %v575_v40, %v573_v39  ;;  %v545_v46 = vadd.f32 %v1521_v18, %v487_v43 }
 0x14a   :  { %v576_v51 = vmax.f32 %v544_v45, 0.0 }
 0x14b   :  { %v491_v47 = vpop.f32.mrb[26].mxu0  ;;  %886 = vmatprep.mubr.bf16.mxu1 %v595_v44  ;;  %v577_v53 = vmax.f32 %v545_v46, 0.0 }
 0x14c   :  { %v546_v48 = vadd.f32 %v1517_v16, %v491_v47  ;;  %v493_v49 = vpop.f32.mrb[27].mxu0  ;;  %887 = vmatmul.mubr.bf16.gmra.mrb[20].mxu1 %v594_v42 }
 0x14d   :  { %v547_v50 = vadd.f32 %v1521_v18, %v493_v49 }
 0x14e   :  { %v578_v52 = vmax.f32 %v546_v48, 0.0 }
 0x14f   :  { %v579_v54 = vmax.f32 %v547_v50, 0.0  ;;  %v497_v55 = vpop.f32.mrb[28].mxu0 }
 0x150   :  { %v596_v56 = vpack.c.bf16 %v578_v52, %v576_v51  ;;  %v499_v57 = vpop.f32.mrb[29].mxu0  ;;  %v548_v59 = vadd.f32 %v1517_v16, %v497_v55 }
 0x151   :  { %v597_v58 = vpack.c.bf16 %v579_v54, %v577_v53  ;;  %v549_v60 = vadd.f32 %v1521_v18, %v499_v57 }
 0x152   :  { %v580_v1 = vmax.f32 %v548_v59, 0.0 }
 0x153   :  { %v503_v61 = vpop.f32.mrb[30].mxu0  ;;  %896 = vmatprep.mubr.bf16.mxu1 %v597_v58  ;;  %v581_v4 = vmax.f32 %v549_v60, 0.0 }
 0x154   :  { %v550_v62 = vadd.f32 %v1517_v16, %v503_v61  ;;  %v505_v63 = vpop.f32.mrb[31].mxu0  ;;  %897 = vmatmul.mubr.bf16.gmra.mrb[24].mxu1 %v596_v56  ;;  %v1089_v16 = vcombine.high %v1558_v2, %v1558_v2 }
 0x155   :  { %v551_v0 = vadd.f32 %v1521_v18, %v505_v63  ;;  %v632_v18 = vld [vmem:[%s1620_s6] sm:$0x3] }
 0x156   :  { %v582_v3 = vmax.f32 %v550_v62, 0.0  ;;  %v1567_v8 = vrot.slane %v632_v18, %v512_v13  ;;  %v1571_v9 = vrot.slane %v632_v18, %v516_v15 }
 0x157   :  { %v583_v5 = vmax.f32 %v551_v0, 0.0 }
 0x158   :  { %v598_v6 = vpack.c.bf16 %v582_v3, %v580_v1 }
 0x159   :  { %v599_v7 = vpack.c.bf16 %v583_v5, %v581_v4 }
 0x15b   :  { %906 = vmatprep.mubr.bf16.mxu1 %v599_v7 }
 0x15c   :  { %907 = vmatmul.mubr.bf16.gmra.mrb[28].mxu1 %v598_v6 }
 0x15d   :  { %1007 = vmatprep.mubr.bf16.mxu1 %v1089_v16 }
 0x1f7   :  { %v838_v10 = vpop.f32.mrb[0].mxu1 }
 0x1f8   :  { %v839_v11 = vadd.f32 %v838_v10, %v1567_v8  ;;  %v840_v14 = vpop.f32.mrb[1].mxu1 }
 0x1f9   :  { %v841_v17 = vadd.f32 %v840_v14, %v1571_v9  ;;  %v842_v19 = vpop.f32.mrb[2].mxu1 }
 0x1fa   :  { %v843_v20 = vadd.f32 %v842_v19, %v1567_v8  ;;  %v844_v21 = vpop.f32.mrb[3].mxu1  ;;  %v917_v23 = vmax.f32 %v839_v11, 0.0 }
 0x1fb   :  { %v845_v22 = vadd.f32 %v844_v21, %v1571_v9  ;;  %v918_v13 = vmax.f32 %v841_v17, 0.0 }
 0x1fc   :  { %v919_v24 = vmax.f32 %v843_v20, 0.0 }
 0x1fd   :  { %v920_v25 = vmax.f32 %v845_v22, 0.0 }
 0x1fe   :  { %v950_v26 = vpack.c.bf16 %v919_v24, %v917_v23 }
 0x1ff   :  { %v951_v12 = vpack.c.bf16 %v920_v25, %v918_v13  ;;  %v848_v15 = vpop.f32.mrb[4].mxu1 }
 0x200   :  { %v849_v27 = vadd.f32 %v848_v15, %v1567_v8  ;;  %v850_v28 = vpop.f32.mrb[5].mxu1 }
 0x201   :  { %v851_v29 = vadd.f32 %v850_v28, %v1571_v9  ;;  %v852_v30 = vpop.f32.mrb[6].mxu1  ;;  %975 = vmatprep.subr.bf16.mxu1 %v951_v12 }
 0x202   :  { %v853_v31 = vadd.f32 %v852_v30, %v1567_v8  ;;  %v854_v32 = vpop.f32.mrb[7].mxu1  ;;  %976 = vmatpush1.bf16.xpose.msra.mxu1 %v950_v26  ;;  %v921_v34 = vmax.f32 %v849_v27, 0.0 }
 0x203   :  { %v855_v33 = vadd.f32 %v854_v32, %v1571_v9  ;;  %v922_v36 = vmax.f32 %v851_v29, 0.0 }
 0x204   :  { %v923_v35 = vmax.f32 %v853_v31, 0.0 }
 0x205   :  { %v924_v37 = vmax.f32 %v855_v33, 0.0 }
 0x206   :  { %v952_v38 = vpack.c.bf16 %v923_v35, %v921_v34 }
 0x207   :  { %v953_v39 = vpack.c.bf16 %v924_v37, %v922_v36  ;;  %v858_v40 = vpop.f32.mrb[8].mxu1 }
 0x208   :  { %v859_v41 = vadd.f32 %v858_v40, %v1567_v8  ;;  %v860_v42 = vpop.f32.mrb[9].mxu1 }
 0x209   :  { %v861_v43 = vadd.f32 %v860_v42, %v1571_v9  ;;  %v862_v44 = vpop.f32.mrb[10].mxu1  ;;  %977 = vmatprep.subr.bf16.mxu1 %v953_v39 }
 0x20a   :  { %v863_v45 = vadd.f32 %v862_v44, %v1567_v8  ;;  %v864_v46 = vpop.f32.mrb[11].mxu1  ;;  %978 = vmatpush1.bf16.xpose.msra.mxu1 %v952_v38  ;;  %v925_v48 = vmax.f32 %v859_v41, 0.0 }
 0x20b   :  { %v865_v47 = vadd.f32 %v864_v46, %v1571_v9  ;;  %v926_v50 = vmax.f32 %v861_v43, 0.0 }
 0x20c   :  { %v927_v49 = vmax.f32 %v863_v45, 0.0 }
 0x20d   :  { %v928_v51 = vmax.f32 %v865_v47, 0.0 }
 0x20e   :  { %v954_v52 = vpack.c.bf16 %v927_v49, %v925_v48 }
 0x20f   :  { %v955_v53 = vpack.c.bf16 %v928_v51, %v926_v50  ;;  %v868_v54 = vpop.f32.mrb[12].mxu1 }
 0x210   :  { %v869_v55 = vadd.f32 %v868_v54, %v1567_v8  ;;  %v870_v56 = vpop.f32.mrb[13].mxu1 }
 0x211   :  { %v871_v57 = vadd.f32 %v870_v56, %v1571_v9  ;;  %v872_v58 = vpop.f32.mrb[14].mxu1  ;;  %979 = vmatprep.subr.bf16.mxu1 %v955_v53 }
 0x212   :  { %v873_v59 = vadd.f32 %v872_v58, %v1567_v8  ;;  %v874_v60 = vpop.f32.mrb[15].mxu1  ;;  %980 = vmatpush1.bf16.xpose.msra.mxu1 %v954_v52  ;;  %v929_v62 = vmax.f32 %v869_v55, 0.0 }
 0x213   :  { %v875_v61 = vadd.f32 %v874_v60, %v1571_v9  ;;  %v930_v0 = vmax.f32 %v871_v57, 0.0 }
 0x214   :  { %v931_v63 = vmax.f32 %v873_v59, 0.0 }
 0x215   :  { %v932_v1 = vmax.f32 %v875_v61, 0.0 }
 0x216   :  { %v956_v3 = vpack.c.bf16 %v931_v63, %v929_v62  ;;  %v1088_v63 = vcombine.low %v1558_v2, %v1558_v2 }
 0x217   :  { %v957_v4 = vpack.c.bf16 %v932_v1, %v930_v0  ;;  %v878_v5 = vpop.f32.mrb[16].mxu1 }
 0x218   :  { %v879_v6 = vadd.f32 %v878_v5, %v1567_v8  ;;  %v880_v7 = vpop.f32.mrb[17].mxu1 }
 0x219   :  { %v881_v16 = vadd.f32 %v880_v7, %v1571_v9  ;;  %v882_v18 = vpop.f32.mrb[18].mxu1  ;;  %981 = vmatprep.subr.bf16.mxu1 %v957_v4 }
 0x21a   :  { %v883_v10 = vadd.f32 %v882_v18, %v1567_v8  ;;  %v884_v11 = vpop.f32.mrb[19].mxu1  ;;  %982 = vmatpush1.bf16.xpose.msra.mxu1 %v956_v3  ;;  %v933_v17 = vmax.f32 %v879_v6, 0.0 }
 0x21b   :  { %v885_v14 = vadd.f32 %v884_v11, %v1571_v9  ;;  %v934_v20 = vmax.f32 %v881_v16, 0.0 }
 0x21c   :  { %v935_v19 = vmax.f32 %v883_v10, 0.0 }
 0x21d   :  { %v936_v21 = vmax.f32 %v885_v14, 0.0 }
 0x21e   :  { %v958_v22 = vpack.c.bf16 %v935_v19, %v933_v17 }
 0x21f   :  { %v959_v23 = vpack.c.bf16 %v936_v21, %v934_v20  ;;  %v888_v24 = vpop.f32.mrb[20].mxu1 }
 0x220   :  { %v889_v13 = vadd.f32 %v888_v24, %v1567_v8  ;;  %v890_v25 = vpop.f32.mrb[21].mxu1 }
 0x221   :  { %v891_v26 = vadd.f32 %v890_v25, %v1571_v9  ;;  %v892_v12 = vpop.f32.mrb[22].mxu1  ;;  %983 = vmatprep.subr.bf16.mxu1 %v959_v23 }
 0x222   :  { %v893_v15 = vadd.f32 %v892_v12, %v1567_v8  ;;  %v894_v27 = vpop.f32.mrb[23].mxu1  ;;  %984 = vmatpush1.bf16.xpose.msra.mxu1 %v958_v22  ;;  %v937_v29 = vmax.f32 %v889_v13, 0.0 }
 0x223   :  { %v895_v28 = vadd.f32 %v894_v27, %v1571_v9  ;;  %v938_v31 = vmax.f32 %v891_v26, 0.0 }
 0x224   :  { %v939_v30 = vmax.f32 %v893_v15, 0.0 }
 0x225   :  { %v940_v32 = vmax.f32 %v895_v28, 0.0 }
 0x226   :  { %v960_v33 = vpack.c.bf16 %v939_v30, %v937_v29 }
 0x227   :  { %v961_v34 = vpack.c.bf16 %v940_v32, %v938_v31  ;;  %v898_v35 = vpop.f32.mrb[24].mxu1 }
 0x228   :  { %v899_v36 = vadd.f32 %v898_v35, %v1567_v8  ;;  %v900_v37 = vpop.f32.mrb[25].mxu1 }
 0x229   :  { %v901_v38 = vadd.f32 %v900_v37, %v1571_v9  ;;  %v902_v39 = vpop.f32.mrb[26].mxu1  ;;  %985 = vmatprep.subr.bf16.mxu1 %v961_v34 }
 0x22a   :  { %v903_v40 = vadd.f32 %v902_v39, %v1567_v8  ;;  %v904_v41 = vpop.f32.mrb[27].mxu1  ;;  %986 = vmatpush1.bf16.xpose.msra.mxu1 %v960_v33  ;;  %v941_v43 = vmax.f32 %v899_v36, 0.0 }
 0x22b   :  { %v905_v42 = vadd.f32 %v904_v41, %v1571_v9  ;;  %v942_v45 = vmax.f32 %v901_v38, 0.0 }
 0x22c   :  { %v943_v44 = vmax.f32 %v903_v40, 0.0 }
 0x22d   :  { %v944_v46 = vmax.f32 %v905_v42, 0.0 }
 0x22e   :  { %v962_v47 = vpack.c.bf16 %v943_v44, %v941_v43 }
 0x22f   :  { %v963_v48 = vpack.c.bf16 %v944_v46, %v942_v45  ;;  %v908_v49 = vpop.f32.mrb[28].mxu1 }
 0x230   :  { %v909_v50 = vadd.f32 %v908_v49, %v1567_v8  ;;  %v910_v51 = vpop.f32.mrb[29].mxu1 }
 0x231   :  { %v911_v52 = vadd.f32 %v910_v51, %v1571_v9  ;;  %v912_v53 = vpop.f32.mrb[30].mxu1  ;;  %987 = vmatprep.subr.bf16.mxu1 %v963_v48 }
 0x232   :  { %v913_v54 = vadd.f32 %v912_v53, %v1567_v8  ;;  %v914_v55 = vpop.f32.mrb[31].mxu1  ;;  %988 = vmatpush1.bf16.xpose.msra.mxu1 %v962_v47  ;;  %v945_v57 = vmax.f32 %v909_v50, 0.0  ;;  %v967_v8 = vstv %s1621_s8 }
 0x233   :  { %v915_v56 = vadd.f32 %v914_v55, %v1571_v9  ;;  %v946_v59 = vmax.f32 %v911_v52, 0.0 }
 0x234   :  { %v947_v58 = vmax.f32 %v913_v54, 0.0 }
 0x235   :  { %v948_v60 = vmax.f32 %v915_v56, 0.0 }
 0x236   :  { %v964_v61 = vpack.c.bf16 %v947_v58, %v945_v57 }
 0x237   :  { %v965_v62 = vpack.c.bf16 %v948_v60, %v946_v59 }
 0x239   :  { %989 = vmatprep.subr.bf16.mxu1 %v965_v62 }
 0x23a   :  { %990 = vmatpush1.bf16.xpose.msra.mxu1 %v964_v61 }
 0x241   :  { %1008 = vmatmul.mubr.bf16.vlgmr.msra.gmra.mrb[32].mxu1 %v1088_v63 }
 0x314   :  { %v1009_v0 = vpop.f32.mrb[32].mxu1 }
 0x315   :  { %v1010_v1 = vadd.f32 %v1009_v0, %v967_v8  ;;  %v1011_v3 = vpop.f32.mrb[33].mxu1 }
 0x316   :  { %v1012_v9 = vpop.f32.mrb[34].mxu1 }
 0x317   :  { %1015 = vst [vmem:[%s1622_s9] sm:$0xff] %v1010_v1  ;;  %v1013_v4 = vpop.f32.mrb[35].mxu1 }

</bundles_post_ra>
